<compile_context>
chip_gen: v5e
topology: v5e:2x2
jax: 0.10.0
libtpu: 0.0.40
codegen_flags: <defaults>
</compile_context>

<pallas_src>
import functools
import math

import jax
import jax.numpy as jnp
from jax.experimental import pallas as pl
from jax.experimental.pallas import tpu as pltpu


def _cdiv(a, b):
    return -(-a // b)


def _round_up(a, b):
    return _cdiv(a, b) * b


@functools.lru_cache(maxsize=None)
def _per_buffer_budget_bytes():
    """Per-pipeline-buffer VMEM budget, gated on chip generation.

    Sized so 2 input + 2 output buffers (+ tiny mask) stay inside the default
    scoped-VMEM limit (v5e: 16 MiB, v6e: 32 MiB, v7x: 32 of 64 MiB physical),
    so no vmem_limit_bytes override is needed.
    """
    try:
        kind = jax.devices()[0].device_kind.lower()
    except Exception:
        kind = ""
    if "v6" in kind:
        return 4 * 1024 * 1024   # 4 bufs * 4 MiB = 16 MiB << 32 MiB default
    if "v5" in kind:
        return 3 * 1024 * 1024   # 4 bufs * 3 MiB = 12 MiB < 16 MiB default
    return 2 * 1024 * 1024       # v7x / unknown: conservative (64 MiB physical)


# ---------------------------------------------------------------------------
# STREAM path: out = x * keep_mask (lane-dense, auto-pipelined)
# ---------------------------------------------------------------------------

def _stream_kernel(x_ref, mask_ref, o_ref):
    # (rows_tile, L) * (1, L): the keep-mask sublane-broadcasts over rows.
    o_ref[...] = x_ref[...] * mask_ref[...]


def _batch_drop_stream(x, sx, sy, rh, rw):
    N, C, H, W = x.shape
    NC, HW = N * C, H * W
    B = jnp.dtype(x.dtype).itemsize
    sub = max(8, 32 // B)  # sublanes per vreg row-group: 8 f32 / 16 bf16 / 32 i8

    # Lane repacking: make the lane axis a multiple of 128 whenever the flat
    # buffer allows it -> unmasked full-lane stores, no lane padding in VMEM.
    f = 128 // math.gcd(HW, 128)
    if f > 1 and NC % f == 0:
        R, L = NC // f, HW * f
    else:
        R, L = NC, HW
    L_pad = _round_up(L, 128)  # honest VMEM accounting when HW % 128 != 0

    # Keep-mask over one packed row, hoisted out of the kernel; sx/sy may be
    # traced int32 scalars, so new offsets never retrace.
    hw = jnp.arange(HW, dtype=jnp.int32)
    h_i, w_i = hw // W, hw % W
    drop = (h_i >= sx) & (h_i < sx + rh) & (w_i >= sy) & (w_i < sy + rw)
    mask = jnp.where(drop, 0, 1).astype(x.dtype)
    if L != HW:
        mask = jnp.tile(mask, L // HW)
    mask = mask.reshape(1, L)

    x2 = x.reshape(R, L)

    # Row-tile sizing against the chip-gated budget (2 in + 2 out buffers),
    # and >=2 grid steps so both v7x TensorCores participate.
    budget = _per_buffer_budget_bytes()
    if R <= sub:
        rows_tile = R
    else:
        rows_tile = max(sub, (budget // (L_pad * B)) // sub * sub)
        rows_tile = min(rows_tile, _round_up(_cdiv(R, 2), sub))
    grid = (pl.cdiv(R, rows_tile),)

    cost = pl.CostEstimate(
        flops=R * L, transcendentals=0, bytes_accessed=2 * R * L * B + L * B
    )

    out2 = pl.pallas_call(
        _stream_kernel,
        out_shape=jax.ShapeDtypeStruct((R, L), x.dtype),
        grid=grid,
        in_specs=[
            pl.BlockSpec((rows_tile, L), lambda i: (i, 0)),
            pl.BlockSpec((1, L), lambda i: (0, 0)),
        ],
        out_specs=pl.BlockSpec((rows_tile, L), lambda i: (i, 0)),
        compiler_params=pltpu.CompilerParams(dimension_semantics=("parallel",)),
        cost_estimate=cost,
    )(x2, mask)
    return out2.reshape(N, C, H, W)


# ---------------------------------------------------------------------------
# RECT path: in-place (aliased) write-only zeroing of the dropped rectangle
# ---------------------------------------------------------------------------

def _batch_drop_rect(x, sxy, rh, rw):
    """Zero x[:, :, sx:sx+rh, sy:sy+rw] in place (output aliases the input)."""
    N, C, H, W = x.shape
    B = jnp.dtype(x.dtype).itemsize
    sub = max(8, 32 // B)

    # Channel-chunk the VMEM zero source so its padded footprint stays small
    # (minor dims pad to (sub, 128) tiles).
    per_c_pad_bytes = _round_up(rh, sub) * _round_up(rw, 128) * B
    cc = max(1, min(C, (2 * 1024 * 1024) // per_c_pad_bytes))
    n_cc = _cdiv(C, cc)
    nsteps = N * n_cc

    def kernel(sxy_ref, x_hbm, o_hbm, zeros_ref, sems):
        del x_hbm  # same HBM buffer as o_hbm (aliased); never read.
        n = pl.program_id(0)
        ci = pl.program_id(1)
        step = n * n_cc + ci
        slot = step % 2
        sx = sxy_ref[0]
        sy = sxy_ref[1]
        # Clamp the last (ragged) channel chunk; the overlap just re-writes
        # zeros, which is idempotent.
        c0 = jnp.minimum(ci * cc, C - cc)

        @pl.when(step == 0)
        def _():
            zeros_ref[...] = jnp.zeros_like(zeros_ref)

        dst = o_hbm.at[n, pl.ds(c0, cc), pl.ds(sx, rh), pl.ds(sy, rw)]

        def copy_desc(sem_slot):
            return pltpu.make_async_copy(zeros_ref, dst, sems.at[sem_slot])

        # Drain the copy issued two steps ago before reusing its semaphore
        # slot (every copy has the same byte count, so the wait amount on the
        # current descriptor is correct).
        @pl.when(step >= 2)
        def _():
            copy_desc(slot).wait()

        copy_desc(slot).start()

        # Final step: drain everything still in flight.
        @pl.when(step == nsteps - 1)
        def _():
            copy_desc(slot).wait()

            @pl.when(step >= 1)
            def _():
                copy_desc(1 - slot).wait()

    return pl.pallas_call(
        kernel,
        out_shape=jax.ShapeDtypeStruct(x.shape, x.dtype),
        grid=(N, n_cc),
        in_specs=[
            pl.BlockSpec(memory_space=pltpu.MemorySpace.SMEM),  # (sx, sy) int32
            pl.BlockSpec(memory_space=pl.ANY),                  # x stays in HBM
        ],
        out_specs=pl.BlockSpec(memory_space=pl.ANY),            # aliased to x
        scratch_shapes=[
            pltpu.VMEM((cc, rh, rw), x.dtype),
            pltpu.SemaphoreType.DMA((2,)),
        ],
        input_output_aliases={1: 0},
        compiler_params=pltpu.CompilerParams(
            dimension_semantics=("arbitrary", "arbitrary"),
        ),
        cost_estimate=pl.CostEstimate(
            flops=0, transcendentals=0, bytes_accessed=N * C * rh * rw * B
        ),
    )(sxy, x)


@functools.lru_cache(maxsize=None)
def _rect_write_supported(dtype_name):
    """One-time eager probe: does the write-only rectangle path lower and
    produce correct results for this dtype (unaligned dynamic minor-dim DMA
    slicing + input/output aliasing)?  Falls back to the streaming kernel if
    not."""
    try:
        dtype = jnp.dtype(dtype_name)
        Np, Cp, Hp, Wp = 2, 3, 24, 8
        rh, rw, sx, sy = 8, 3, 5, 1
        xp = (jnp.arange(Np * Cp * Hp * Wp, dtype=jnp.float32) % 7.0 + 1.0)
        xp = xp.astype(dtype).reshape(Np, Cp, Hp, Wp)
        sxy = jnp.array([sx, sy], dtype=jnp.int32)
        got = jax.block_until_ready(_batch_drop_rect(xp, sxy, rh, rw))
        want = xp.at[:, :, sx:sx + rh, sy:sy + rw].set(0)
        return bool(jnp.array_equal(got, want))
    except Exception:
        return False


# ---------------------------------------------------------------------------
# Public entry point
# ---------------------------------------------------------------------------

def batch_drop(x, sx, sy, h_ratio, w_ratio, training=True):
    """Pallas implementation of BatchDrop.forward.

    x: (N, C, H, W).  sx, sy: start offsets of the dropped block (the PyTorch
    module draws them with random.randint); they may be Python ints or traced
    int32 scalars, so new offsets never retrace under jit.
    """
    if not training:
        return x

    N, C, H, W = x.shape
    rh = int(round(h_ratio * H))
    rw = int(round(w_ratio * W))
    if rh <= 0 or rw <= 0:
        return x  # empty drop block == identity (matches x * all-ones mask)

    sx = jnp.asarray(sx, jnp.int32)
    sy = jnp.asarray(sy, jnp.int32)

    if _rect_write_supported(x.dtype.name):
        return _batch_drop_rect(x, jnp.stack([sx, sy]), rh, rw)
    return _batch_drop_stream(x, sx, sy, rh, rw)


if __name__ == "__main__":
    key = jax.random.PRNGKey(0)
    k_x, k_sx, k_sy = jax.random.split(key, 3)

    N, C, H, W = 2, 4, 16, 16
    h_ratio, w_ratio = 0.33, 0.33
    x = jax.random.normal(k_x, (N, C, H, W), dtype=jnp.float32)

    rh = int(round(h_ratio * H))
    rw = int(round(w_ratio * W))
    # Mirror random.randint(0, h - rh) / (0, w - rw) deterministically.
    sx = jax.random.randint(k_sx, (), 0, H - rh + 1, dtype=jnp.int32)
    sy = jax.random.randint(k_sy, (), 0, W - rw + 1, dtype=jnp.int32)

    use_rect = _rect_write_supported("float32")

    # jit once; (sx, sy) are traced, so new random offsets reuse the same
    # executable.  With the rect path the input buffer is donated (in-place).
    bd = jax.jit(
        batch_drop,
        static_argnames=("h_ratio", "w_ratio", "training"),
        donate_argnums=(0,) if use_rect else (),
    )

    def run(sx_, sy_):
        x_in = jnp.copy(x) if use_rect else x
        return jax.block_until_ready(
            bd(x_in, sx_, sy_, h_ratio=h_ratio, w_ratio=w_ratio, training=True)
        )

    out = run(sx, sy)

    # Pure-JAX reference of the masking semantics.
    h_idx = jnp.arange(H)[:, None]
    w_idx = jnp.arange(W)[None, :]

    def reference(sx_, sy_):
        drop = (h_idx >= sx_) & (h_idx < sx_ + rh) & (w_idx >= sy_) & (w_idx < sy_ + rw)
        return x * jnp.where(drop, 0.0, 1.0).astype(x.dtype)[None, None, :, :]

    assert out.shape == x.shape and out.dtype == x.dtype
    assert jnp.allclose(out, reference(sx, sy)), "mismatch vs reference"

    # The streaming fallback path must also be correct on this hardware.
    out_stream = jax.block_until_ready(_batch_drop_stream(x, sx, sy, rh, rw))
    assert jnp.allclose(out_stream, reference(sx, sy)), "stream path mismatch"

    # Different offsets reuse the same compiled executable (no retrace).
    sx2 = jnp.int32(0)
    sy2 = jnp.int32(W - rw)
    out2 = run(sx2, sy2)
    assert jnp.allclose(out2, reference(sx2, sy2)), "mismatch at second offsets"

    # Eval-mode path is the identity.
    out_eval = batch_drop(x, sx, sy, h_ratio, w_ratio, training=False)
    assert jnp.array_equal(out_eval, x)

    print("KERNEL_OK")
</pallas_src>

<mosaic_0001>
module attributes {stable_mosaic.version = 11 : i64} {
  func.func @kernel(%arg0: i32, %arg1: i32, %arg2: memref<2xi32, #tpu.memory_space<smem>>, %arg3: memref<2x3x24x8xf32, #tpu.memory_space<any>>, %arg4: memref<2x3x24x8xf32, #tpu.memory_space<any>>, %arg5: memref<3x8x3xf32, #tpu.memory_space<vmem>>, %arg6: memref<2x!tpu.dma_semaphore, #tpu.memory_space<semaphore_mem>>) attributes {dimension_semantics = [#tpu.dimension_semantics<arbitrary>, #tpu.dimension_semantics<arbitrary>], iteration_bounds = array<i64: 2, 1>, scalar_prefetch = 0 : i64, scratch_operands = 2 : i64, tpu.core_type = #tpu.core_type<tc>, window_params = [{transform_indices = @transform_0, window_bounds = array<i64: 2>}, {}, {}]} {
    %c1_i32 = arith.constant 1 : i32
    %0 = arith.muli %arg0, %c1_i32 : i32
    %1 = arith.addi %0, %arg1 : i32
    %c2_i32 = arith.constant 2 : i32
    %c0_i32 = arith.constant 0 : i32
    %2 = arith.cmpi eq, %c2_i32, %c0_i32 : i32
    %c1_i32_0 = arith.constant 1 : i32
    %3 = arith.select %2, %c1_i32_0, %c2_i32 : i32
    %4 = arith.remsi %1, %3 : i32
    %c0_i32_1 = arith.constant 0 : i32
    %5 = arith.cmpi ne, %4, %c0_i32_1 : i32
    %c0_i32_2 = arith.constant 0 : i32
    %6 = arith.cmpi slt, %4, %c0_i32_2 : i32
    %c0_i32_3 = arith.constant 0 : i32
    %7 = arith.cmpi slt, %3, %c0_i32_3 : i32
    %8 = arith.xori %6, %7 : i1
    %9 = arith.andi %8, %5 : i1
    %10 = arith.addi %4, %3 : i32
    %11 = arith.select %9, %10, %4 : i32
    %c0 = arith.constant 0 : index
    %12 = memref.load %arg2[%c0] : memref<2xi32, #tpu.memory_space<smem>>
    %c1 = arith.constant 1 : index
    %13 = memref.load %arg2[%c1] : memref<2xi32, #tpu.memory_space<smem>>
    %c3_i32 = arith.constant 3 : i32
    %14 = arith.muli %arg1, %c3_i32 : i32
    %c0_i32_4 = arith.constant 0 : i32
    %15 = arith.minsi %14, %c0_i32_4 : i32
    %c0_i32_5 = arith.constant 0 : i32
    %16 = arith.cmpi eq, %1, %c0_i32_5 : i32
    %17 = arith.extui %16 : i1 to i32
    %c0_i32_6 = arith.constant 0 : i32
    %18 = arith.cmpi ne, %17, %c0_i32_6 : i32
    scf.if %18 {
      %cst = arith.constant 0.000000e+00 : f32
      %29 = vector.broadcast %cst : f32 to vector<3x8x3xf32>
      %c0_11 = arith.constant 0 : index
      %c0_12 = arith.constant 0 : index
      %c0_13 = arith.constant 0 : index
      %30 = vector.load %arg5[%c0_11, %c0_12, %c0_13] : memref<3x8x3xf32, #tpu.memory_space<vmem>>, vector<3x8x3xf32>
      tpu.vector_store %arg5[%c0_11, %c0_12, %c0_13], %29 {strides = array<i32>} : memref<3x8x3xf32, #tpu.memory_space<vmem>>, vector<3x8x3xf32>,
    } else {
    }
    %c2_i32_7 = arith.constant 2 : i32
    %19 = arith.cmpi sge, %1, %c2_i32_7 : i32
    %20 = arith.extui %19 : i1 to i32
    %c0_i32_8 = arith.constant 0 : i32
    %21 = arith.cmpi ne, %20, %c0_i32_8 : i32
    scf.if %21 {
      %29 = tpu.memref_slice %arg4[%arg0, %15, %12, %13] : memref<2x3x24x8xf32, #tpu.memory_space<any>> -> memref<1x3x8x3xf32, #tpu.memory_space<any>>
      %30 = tpu.memref_squeeze %29 : memref<1x3x8x3xf32, #tpu.memory_space<any>> -> memref<3x8x3xf32, #tpu.memory_space<any>>
      %31 = tpu.memref_slice %arg6[%11] : memref<2x!tpu.dma_semaphore, #tpu.memory_space<semaphore_mem>> -> memref<1x!tpu.dma_semaphore, #tpu.memory_space<semaphore_mem>>
      %32 = tpu.memref_squeeze %31 : memref<1x!tpu.dma_semaphore, #tpu.memory_space<semaphore_mem>> -> memref<!tpu.dma_semaphore, #tpu.memory_space<semaphore_mem>>
      tpu.wait_dma2 semaphore(%32 : memref<!tpu.dma_semaphore, #tpu.memory_space<semaphore_mem>>) src(%arg5 : memref<3x8x3xf32, #tpu.memory_space<vmem>>) dst(%30 : memref<3x8x3xf32, #tpu.memory_space<any>>)
    } else {
    }
    %22 = tpu.memref_slice %arg4[%arg0, %15, %12, %13] : memref<2x3x24x8xf32, #tpu.memory_space<any>> -> memref<1x3x8x3xf32, #tpu.memory_space<any>>
    %23 = tpu.memref_squeeze %22 : memref<1x3x8x3xf32, #tpu.memory_space<any>> -> memref<3x8x3xf32, #tpu.memory_space<any>>
    %24 = tpu.memref_slice %arg6[%11] : memref<2x!tpu.dma_semaphore, #tpu.memory_space<semaphore_mem>> -> memref<1x!tpu.dma_semaphore, #tpu.memory_space<semaphore_mem>>
    %25 = tpu.memref_squeeze %24 : memref<1x!tpu.dma_semaphore, #tpu.memory_space<semaphore_mem>> -> memref<!tpu.dma_semaphore, #tpu.memory_space<semaphore_mem>>
    tpu.enqueue_dma source(%arg5 : memref<3x8x3xf32, #tpu.memory_space<vmem>>) target(%23 : memref<3x8x3xf32, #tpu.memory_space<any>>) target_semaphore(%25 : memref<!tpu.dma_semaphore, #tpu.memory_space<semaphore_mem>>)
    %c1_i32_9 = arith.constant 1 : i32
    %26 = arith.cmpi eq, %1, %c1_i32_9 : i32
    %27 = arith.extui %26 : i1 to i32
    %c0_i32_10 = arith.constant 0 : i32
    %28 = arith.cmpi ne, %27, %c0_i32_10 : i32
    scf.if %28 {
      %29 = tpu.memref_slice %arg4[%arg0, %15, %12, %13] : memref<2x3x24x8xf32, #tpu.memory_space<any>> -> memref<1x3x8x3xf32, #tpu.memory_space<any>>
      %30 = tpu.memref_squeeze %29 : memref<1x3x8x3xf32, #tpu.memory_space<any>> -> memref<3x8x3xf32, #tpu.memory_space<any>>
      %31 = tpu.memref_slice %arg6[%11] : memref<2x!tpu.dma_semaphore, #tpu.memory_space<semaphore_mem>> -> memref<1x!tpu.dma_semaphore, #tpu.memory_space<semaphore_mem>>
      %32 = tpu.memref_squeeze %31 : memref<1x!tpu.dma_semaphore, #tpu.memory_space<semaphore_mem>> -> memref<!tpu.dma_semaphore, #tpu.memory_space<semaphore_mem>>
      tpu.wait_dma2 semaphore(%32 : memref<!tpu.dma_semaphore, #tpu.memory_space<semaphore_mem>>) src(%arg5 : memref<3x8x3xf32, #tpu.memory_space<vmem>>) dst(%30 : memref<3x8x3xf32, #tpu.memory_space<any>>)
      %c1_i32_11 = arith.constant 1 : i32
      %33 = arith.cmpi sge, %1, %c1_i32_11 : i32
      %34 = arith.extui %33 : i1 to i32
      %c0_i32_12 = arith.constant 0 : i32
      %35 = arith.cmpi ne, %34, %c0_i32_12 : i32
      scf.if %35 {
        %c1_i32_13 = arith.constant 1 : i32
        %36 = arith.subi %c1_i32_13, %11 : i32
        %37 = tpu.memref_slice %arg4[%arg0, %15, %12, %13] : memref<2x3x24x8xf32, #tpu.memory_space<any>> -> memref<1x3x8x3xf32, #tpu.memory_space<any>>
        %38 = tpu.memref_squeeze %37 : memref<1x3x8x3xf32, #tpu.memory_space<any>> -> memref<3x8x3xf32, #tpu.memory_space<any>>
        %39 = tpu.memref_slice %arg6[%36] : memref<2x!tpu.dma_semaphore, #tpu.memory_space<semaphore_mem>> -> memref<1x!tpu.dma_semaphore, #tpu.memory_space<semaphore_mem>>
        %40 = tpu.memref_squeeze %39 : memref<1x!tpu.dma_semaphore, #tpu.memory_space<semaphore_mem>> -> memref<!tpu.dma_semaphore, #tpu.memory_space<semaphore_mem>>
        tpu.wait_dma2 semaphore(%40 : memref<!tpu.dma_semaphore, #tpu.memory_space<semaphore_mem>>) src(%arg5 : memref<3x8x3xf32, #tpu.memory_space<vmem>>) dst(%38 : memref<3x8x3xf32, #tpu.memory_space<any>>)
      } else {
      }
    } else {
    }
    return
  }
  func.func @transform_0(%arg0: i32, %arg1: i32) -> i32 {
    %c0_i32 = arith.constant 0 : i32
    %c0_i32_0 = arith.constant 0 : i32
    return %c0_i32 : i32
  }
}

module attributes {stable_mosaic.version = 11 : i64} {
  func.func @_stream_kernel(%arg0: i32, %arg1: memref<8x256xf32, #tpu.memory_space<vmem>>, %arg2: memref<1x256xf32, #tpu.memory_space<vmem>>, %arg3: memref<8x256xf32, #tpu.memory_space<vmem>>) attributes {dimension_semantics = [#tpu.dimension_semantics<parallel>], iteration_bounds = array<i64: 1>, scalar_prefetch = 0 : i64, scratch_operands = 0 : i64, tpu.core_type = #tpu.core_type<tc>, window_params = [{transform_indices = @transform_0, window_bounds = array<i64: 8, 256>}, {pipeline_mode = #tpu.pipeline_mode<synchronous>, transform_indices = @transform_1, window_bounds = array<i64: 1, 256>}, {transform_indices = @transform_2, window_bounds = array<i64: 8, 256>}]} {
    %c0 = arith.constant 0 : index
    %c0_0 = arith.constant 0 : index
    %0 = vector.load %arg1[%c0, %c0_0] : memref<8x256xf32, #tpu.memory_space<vmem>>, vector<8x256xf32>
    %c0_1 = arith.constant 0 : index
    %c0_2 = arith.constant 0 : index
    %1 = vector.load %arg2[%c0_1, %c0_2] : memref<1x256xf32, #tpu.memory_space<vmem>>, vector<1x256xf32>
    %2 = vector.broadcast %1 : vector<1x256xf32> to vector<8x256xf32>
    %3 = arith.mulf %0, %2 : vector<8x256xf32>
    %c0_3 = arith.constant 0 : index
    %c0_4 = arith.constant 0 : index
    %4 = vector.load %arg3[%c0_3, %c0_4] : memref<8x256xf32, #tpu.memory_space<vmem>>, vector<8x256xf32>
    tpu.vector_store %arg3[%c0_3, %c0_4], %3 {strides = array<i32>} : memref<8x256xf32, #tpu.memory_space<vmem>>, vector<8x256xf32>,
    return
  }
  func.func @transform_0(%arg0: i32) -> (i32, i32) {
    %c0_i32 = arith.constant 0 : i32
    %c0_i32_0 = arith.constant 0 : i32
    return %arg0, %c0_i32 : i32, i32
  }
  func.func @transform_1(%arg0: i32) -> (i32, i32) {
    %c0_i32 = arith.constant 0 : i32
    %c0_i32_0 = arith.constant 0 : i32
    %c0_i32_1 = arith.constant 0 : i32
    return %c0_i32, %c0_i32_0 : i32, i32
  }
  func.func @transform_2(%arg0: i32) -> (i32, i32) {
    %c0_i32 = arith.constant 0 : i32
    %c0_i32_0 = arith.constant 0 : i32
    return %arg0, %c0_i32 : i32, i32
  }
}

</mosaic_0001>

<bundles_post_ra>
// kernel: batch_drop.1
= control target key start
LH: loop header
LB: loop body
LE: loop exit
PB: predicated region body
PF: predicated region fallthrough
CT: control target
= control target key end

     0   :  { %s57_s0 = inlined_call_operand.vmem [shape: f32[8,256], index: 0, kind: input, shape index: {}]   ;;  %s58_s1 = inlined_call_operand.vmem [shape: f32[1,256], index: 1, kind: input, shape index: {}]   ;;  %s59_s2 = inlined_call_operand.vmem [shape: f32[8,256], index: 2, kind: output, shape index: {}]  }
   0x1   :  { %v11_v0 = vld [vmem:[%s57_s0] sm:$0xff]  ;;  %v12_v2 = vld [vmem:[%s57_s0 + $0x8] sm:$0xff] }
   0x2   :  { %v13_v1 = vld [vmem:[%s58_s1] sm:$0x3] }
   0x3   :  { %v15_v3 = vperm.slane %v13_v1, 0  ;;  %v16_v4 = vperm.slane %v13_v1, 1 }
   0x5   :  { %v19_v5 = vmul.f32 %v15_v3, %v11_v0  ;;  %v20_v6 = vmul.f32 %v16_v4, %v12_v2 }
   0x7   :  { %21 = vst [vmem:[%s59_s2] sm:$0xff] %v19_v5 }
   0x8   :  { %22 = vst [vmem:[%s59_s2 + $0x8] sm:$0xff] %v20_v6 }

</bundles_post_ra>
